<compile_context>
chip_gen: v7x
topology: tpu7x:2x2x1
jax: 0.10.0
libtpu: 0.0.40
codegen_flags: <defaults>
</compile_context>

<pallas_src>
import math

import jax
import jax.numpy as jnp
from jax.experimental import pallas as pl
from jax.experimental.pallas import tpu as pltpu

C = 1.0                    # ball curvature magnitude
PROJ_EPS = 4e-3            # float32 boundary eps (geoopt convention)
MIN_NORM = 1e-15
ATANH_CLAMP = 1.0 - 1e-5
# logmap0(project(expmap0(u))) == u                         if ||u|| <= MAX_TAN_NORM
#                              == MAX_TAN_NORM * u / ||u||  otherwise
MAX_TAN_NORM = 0.5 * math.log((2.0 - PROJ_EPS) / PROJ_EPS)  # = artanh(1 - PROJ_EPS)


def _round_up(x, m):
    return ((x + m - 1) // m) * m


# ---------------- exact Poincare helpers (wrapper + pure-JAX reference) ----------
def _safe_norm(x):
    return jnp.maximum(jnp.sqrt(jnp.sum(x * x, axis=-1, keepdims=True)), MIN_NORM)


def _artanh(z):
    z = jnp.clip(z, -ATANH_CLAMP, ATANH_CLAMP)
    return 0.5 * jnp.log((1.0 + z) / (1.0 - z))


def _expmap0(u):
    n = _safe_norm(u)                       # sqrt(c) == 1
    return jnp.tanh(n) * u / n


def _logmap0(x):
    n = _safe_norm(x)
    return _artanh(n) * x / n


def _project(x):
    maxnorm = 1.0 - PROJ_EPS
    n = _safe_norm(x)
    return jnp.where(n > maxnorm, x / n * maxnorm, x)


def _mobius_add(x, y):
    x2 = jnp.sum(x * x, axis=-1, keepdims=True)
    y2 = jnp.sum(y * y, axis=-1, keepdims=True)
    xy = jnp.sum(x * y, axis=-1, keepdims=True)
    num = (1.0 + 2.0 * xy + y2) * x + (1.0 - x2) * y
    den = 1.0 + 2.0 * xy + x2 * y2
    return num / jnp.maximum(den, MIN_NORM)


# ---------------- hoisted relation-batched pre-aggregation (wrapper, exact f32) ---
def _build_tangents(seq, w_rel, bias):
    """seq: (N, in_ft); w_rel: (R, out_ft, in_ft); bias: (R, out_ft).
    Returns logmap0 of the per-relation hyperbolic features: (R, N, out_ft)."""
    h0 = _expmap0(seq)                                      # (N, in_ft)
    h0n = _safe_norm(h0)                                    # (N, 1)
    ratio = _artanh(h0n) / h0n                              # (N, 1)
    # mobius_matvec(weight[r], h0) for all relations at once
    mx = jnp.einsum('ni,roi->rno', h0, w_rel)               # (R, N, out_ft)
    mxn = _safe_norm(mx)                                    # (R, N, 1)
    res = jnp.tanh(mxn * ratio[None]) * mx / mxn
    zero_row = jnp.sum(jnp.abs(mx), axis=-1, keepdims=True) == 0.0
    h = jnp.where(zero_row, 0.0, res)                       # geoopt zero-row guard
    h = _project(h)
    hyp_bias = _project(_expmap0(bias))[:, None, :]         # (R, 1, out_ft)
    h = _project(_mobius_add(h, hyp_bias))
    return _logmap0(h)                                      # (R, N, out_ft)


# ---------------- Pallas kernel: grid = (relation, node-row-tile) ----------------
def _clamp_tangent_norm(x):
    # == logmap0(project(expmap0(x))) for the c = 1 Poincare ball.
    n = jnp.maximum(jnp.sqrt(jnp.sum(x * x, axis=-1, keepdims=True)), MIN_NORM)
    return jnp.where(n > MAX_TAN_NORM, x * (MAX_TAN_NORM / n), x)


def hrgcn_kernel(tan_ref, adj_ref, o_ref):
    adj = adj_ref[0]                                        # (TN, N), caller dtype
    tan = tan_ref[0]                                        # (N, OF_PAD), same dtype
    # HypAgg: support = adj @ logmap0(h)   (MXU, f32 accumulate)
    support = jnp.dot(adj, tan, preferred_element_type=jnp.float32)   # (TN, OF_PAD)
    # logmap0(project(expmap0(support)))  -> norm clamp
    u = _clamp_tangent_norm(support)
    # HypAct with act = ReLU, then final logmap0(project(expmap0(.)))
    xt = jnp.maximum(u, 0.0)
    o_ref[0] = _clamp_tangent_norm(xt).astype(o_ref.dtype)


# ---------------- VMEM budgeting (per-generation, total need) ---------------------
def _vmem_capacity_bytes():
    try:
        cap = int(pltpu.get_tpu_info().vmem_capacity_bytes)
        if cap > 0:
            return cap
    except Exception:
        pass
    return 64 << 20          # conservative fallback (v7x per-core VMEM)


def _vmem_need(tn, N, of_pad, adj_bytes, tan_bytes):
    return (2 * N * of_pad * tan_bytes        # per-relation tangent double-buffer
            + 2 * tn * N * adj_bytes          # adjacency row-tile double-buffer
            + 2 * tn * of_pad * 4             # f32 output double-buffer
            + 6 * tn * of_pad * 4)            # in-kernel f32 temporaries / slack


def _pick_row_tile(N, of_pad, adj_bytes, tan_bytes, budget):
    cands = [N] + [d for d in range((N // 8) * 8, 7, -8) if d < N and N % d == 0]
    for tn in cands:
        if _vmem_need(tn, N, of_pad, adj_bytes, tan_bytes) <= budget:
            return tn
    return cands[-1]          # smallest valid tile; compile will surface if impossible


# ---------------- wrapper ----------------------------------------------------------
def hrgcn_forward(seqs, adjs, comp, weight, bias, *, row_tile=None):
    """seqs: (1, N, in_ft); adjs: (num_rels, N, N);
    comp: (num_rels, num_bases); weight: (num_bases, in_ft, out_ft);
    bias: (num_rels, out_ft)."""
    num_rels, num_bases = comp.shape
    _, in_ft, out_ft = weight.shape
    N = seqs.shape[1]
    OF_PAD = _round_up(out_ft, 128)               # lane-dense feature axis

    # basis decomposition: mirrors torch.mm + .view(num_rels, out_ft, in_ft)
    w_rel = (comp.astype(jnp.float32)
             @ weight.reshape(num_bases, -1).astype(jnp.float32)
             ).reshape(num_rels, out_ft, in_ft)

    # hoisted relation-batched pre-aggregation (dropout p = 0.0 -> identity)
    # TODO(synk): stochastic dropout (training=True, p>0) not implemented in-kernel.
    seq = seqs[0].astype(jnp.float32)
    tan = _build_tangents(seq, w_rel, bias.astype(jnp.float32))      # (R, N, out_ft)
    tan = jnp.pad(tan, ((0, 0), (0, 0), (0, OF_PAD - out_ft)))       # zero lane pad
    # Match the adjacency dtype for a single-dtype MXU matmul; the adjacency is
    # streamed exactly as provided (no wrapper-side cast over the big array).
    tan = tan.astype(adjs.dtype)

    adj_bytes = adjs.dtype.itemsize
    tan_bytes = tan.dtype.itemsize
    vmem_cap = _vmem_capacity_bytes()
    budget = (vmem_cap * 3) // 4                  # ~48 MiB v7x, ~96 MiB v5e/v6e

    TN = row_tile if row_tile is not None else _pick_row_tile(
        N, OF_PAD, adj_bytes, tan_bytes, budget)
    assert N % TN == 0 and (TN % 8 == 0 or TN == N), "bad row tile"
    num_tiles = N // TN

    need = _vmem_need(TN, N, OF_PAD, adj_bytes, tan_bytes)
    vmem_limit = int(min(max(vmem_cap - (2 << 20), 32 << 20),
                         max(32 << 20, need + (4 << 20))))

    out = pl.pallas_call(
        hrgcn_kernel,
        out_shape=jax.ShapeDtypeStruct((num_rels, N, OF_PAD), jnp.float32),
        grid_spec=pltpu.PrefetchScalarGridSpec(
            num_scalar_prefetch=0,
            grid=(num_rels, num_tiles),
            in_specs=[
                # per-relation tangent: constant across the row-tile axis, so it
                # is DMA'd once per relation change.
                pl.BlockSpec((1, N, OF_PAD), lambda r, t: (r, 0, 0)),
                # adjacency row tile: the dominant, fully pipelined HBM stream.
                pl.BlockSpec((1, TN, N), lambda r, t: (r, t, 0)),
            ],
            out_specs=pl.BlockSpec((1, TN, OF_PAD), lambda r, t: (r, t, 0)),
        ),
        compiler_params=pltpu.CompilerParams(
            dimension_semantics=("parallel", "parallel"),
            vmem_limit_bytes=vmem_limit),
    )(tan, adjs)

    out = out[:, :, :out_ft]                      # drop lane padding
    # torch.squeeze(torch.stack(out)) with batch == 1
    return jnp.squeeze(out)


# ---------------- pure-JAX reference (for correctness check) ----------------------
def hrgcn_reference(seqs, adjs, comp, weight, bias):
    num_rels, num_bases = comp.shape
    _, in_ft, out_ft = weight.shape
    w_rel = (comp @ weight.reshape(num_bases, -1)).reshape(num_rels, out_ft, in_ft)
    seq = seqs[0]
    outs = []
    for i in range(num_rels):
        h = _expmap0(seq)
        mx = h @ w_rel[i].T
        res = jnp.tanh(_safe_norm(mx) / _safe_norm(h) * _artanh(_safe_norm(h))) * mx / _safe_norm(mx)
        h = _project(jnp.where(jnp.sum(jnp.abs(mx), -1, keepdims=True) == 0, 0.0, res))
        hb = _project(_expmap0(bias[i][None, :]))
        h = _project(_mobius_add(h, hb))
        h = _project(_expmap0(adjs[i] @ _logmap0(h)))
        h = _project(_expmap0(jnp.maximum(_logmap0(h), 0.0)))
        outs.append(_logmap0(h))
    return jnp.squeeze(jnp.stack(outs))


if __name__ == "__main__":
    # small, deterministic shapes consistent with the module
    N, in_ft, out_ft = 64, 8, 16
    num_rels, num_bases = 2, 2
    # act = 'relu', dropout = 0.0 (so eval/train dropout are identical)

    key = jax.random.PRNGKey(0)
    k1, k2, k3, k4 = jax.random.split(key, 4)

    seqs = jax.random.normal(k1, (1, N, in_ft), dtype=jnp.float32) * 0.5
    adjs = jax.random.uniform(k2, (num_rels, N, N), dtype=jnp.float32) / N

    # deterministic xavier-uniform-like init (gain = sqrt(2)), bias = 0
    gain = math.sqrt(2.0)
    w_bound = gain * math.sqrt(6.0 / (in_ft * out_ft + num_bases * out_ft))
    c_bound = gain * math.sqrt(6.0 / (num_rels + num_bases))
    weight = jax.random.uniform(k3, (num_bases, in_ft, out_ft), jnp.float32,
                                -w_bound, w_bound)
    comp = jax.random.uniform(k4, (num_rels, num_bases), jnp.float32,
                              -c_bound, c_bound)
    bias = jnp.zeros((num_rels, out_ft), jnp.float32)

    # row_tile=32 forces a multi-row-tile grid so the tiled adjacency stream
    # (multiple grid steps per relation) is exercised.
    out = hrgcn_forward(seqs, adjs, comp, weight, bias, row_tile=32)
    out = jax.block_until_ready(out)

    ref = hrgcn_reference(seqs, adjs, comp, weight, bias)
    assert out.shape == ref.shape == (num_rels, N, out_ft)
    assert bool(jnp.all(jnp.isfinite(out)))
    err = float(jnp.max(jnp.abs(out - ref)))
    # Hoisted exact-f32 tangent build + collapsed (clamp/ReLU/clamp) epilogue:
    # the only kernel-side numeric work is the f32 aggregation matmul and two
    # cheap norm clamps, so the error sits far below this bound.
    assert err < 2e-3, f"mismatch vs pure-JAX reference: {err}"

    print("KERNEL_OK")
</pallas_src>

<mosaic_0001>
module attributes {stable_mosaic.version = 11 : i64} {
  func.func @hrgcn_kernel(%arg0: i32, %arg1: i32, %arg2: memref<1x64x128xf32, #tpu.memory_space<vmem>>, %arg3: memref<1x32x64xf32, #tpu.memory_space<vmem>>, %arg4: memref<1x32x128xf32, #tpu.memory_space<vmem>>) attributes {dimension_semantics = [#tpu.dimension_semantics<parallel>, #tpu.dimension_semantics<parallel>], iteration_bounds = array<i64: 2, 2>, scalar_prefetch = 0 : i64, scratch_operands = 0 : i64, tpu.core_type = #tpu.core_type<tc>, window_params = [{transform_indices = @transform_0, window_bounds = array<i64: 1, 64, 128>}, {transform_indices = @transform_1, window_bounds = array<i64: 1, 32, 64>}, {transform_indices = @transform_2, window_bounds = array<i64: 1, 32, 128>}]} {
    %c0 = arith.constant 0 : index
    %c0_0 = arith.constant 0 : index
    %c0_1 = arith.constant 0 : index
    %0 = vector.load %arg3[%c0, %c0_0, %c0_1] : memref<1x32x64xf32, #tpu.memory_space<vmem>>, vector<1x32x64xf32>
    %1 = vector.shape_cast %0 : vector<1x32x64xf32> to vector<32x64xf32>
    %c0_2 = arith.constant 0 : index
    %c0_3 = arith.constant 0 : index
    %c0_4 = arith.constant 0 : index
    %2 = vector.load %arg2[%c0_2, %c0_3, %c0_4] : memref<1x64x128xf32, #tpu.memory_space<vmem>>, vector<1x64x128xf32>
    %3 = vector.shape_cast %2 : vector<1x64x128xf32> to vector<64x128xf32>
    %cst = arith.constant dense<0.000000e+00> : vector<32x128xf32>
    %4 = tpu.matmul %1, %3, %cst {dimension_numbers = #tpu.dot_dimension_numbers<[1], [0], [0], [1], [0, 0, 1, 1], [], []>} : vector<32x64xf32>, vector<64x128xf32>, vector<32x128xf32> -> vector<32x128xf32>
    %5 = arith.mulf %4, %4 : vector<32x128xf32>
    %cst_5 = arith.constant dense<0.000000e+00> : vector<32xf32>
    %6 = vector.multi_reduction <add>, %5, %cst_5 [1] : vector<32x128xf32> to vector<32xf32>
    %7 = vector.shape_cast %6 : vector<32xf32> to vector<32x1xf32>
    %8 = math.sqrt %7 : vector<32x1xf32>
    %cst_6 = arith.constant 1.000000e-15 : f32
    %9 = vector.broadcast %cst_6 : f32 to vector<32x1xf32>
    %10 = arith.maximumf %8, %9 : vector<32x1xf32>
    %cst_7 = arith.constant 3.10630298 : f32
    %11 = vector.broadcast %cst_7 : f32 to vector<32x1xf32>
    %12 = arith.cmpf ogt, %10, %11 : vector<32x1xf32>
    %cst_8 = arith.constant 3.10630298 : f32
    %13 = vector.broadcast %cst_8 : f32 to vector<32x1xf32>
    %14 = arith.divf %13, %10 : vector<32x1xf32>
    %15 = vector.broadcast %14 : vector<32x1xf32> to vector<32x128xf32>
    %16 = arith.mulf %4, %15 : vector<32x128xf32>
    %17 = vector.shape_cast %12 : vector<32x1xi1> to vector<32x1xi1>
    %18 = vector.broadcast %17 : vector<32x1xi1> to vector<32x128xi1>
    %19 = arith.select %18, %16, %4 : vector<32x128xi1>, vector<32x128xf32>
    %cst_9 = arith.constant 0.000000e+00 : f32
    %20 = vector.broadcast %cst_9 : f32 to vector<32x128xf32>
    %21 = arith.maximumf %19, %20 : vector<32x128xf32>
    %22 = arith.mulf %21, %21 : vector<32x128xf32>
    %cst_10 = arith.constant dense<0.000000e+00> : vector<32xf32>
    %23 = vector.multi_reduction <add>, %22, %cst_10 [1] : vector<32x128xf32> to vector<32xf32>
    %24 = vector.shape_cast %23 : vector<32xf32> to vector<32x1xf32>
    %25 = math.sqrt %24 : vector<32x1xf32>
    %cst_11 = arith.constant 1.000000e-15 : f32
    %26 = vector.broadcast %cst_11 : f32 to vector<32x1xf32>
    %27 = arith.maximumf %25, %26 : vector<32x1xf32>
    %cst_12 = arith.constant 3.10630298 : f32
    %28 = vector.broadcast %cst_12 : f32 to vector<32x1xf32>
    %29 = arith.cmpf ogt, %27, %28 : vector<32x1xf32>
    %cst_13 = arith.constant 3.10630298 : f32
    %30 = vector.broadcast %cst_13 : f32 to vector<32x1xf32>
    %31 = arith.divf %30, %27 : vector<32x1xf32>
    %32 = vector.broadcast %31 : vector<32x1xf32> to vector<32x128xf32>
    %33 = arith.mulf %21, %32 : vector<32x128xf32>
    %34 = vector.shape_cast %29 : vector<32x1xi1> to vector<32x1xi1>
    %35 = vector.broadcast %34 : vector<32x1xi1> to vector<32x128xi1>
    %36 = arith.select %35, %33, %21 : vector<32x128xi1>, vector<32x128xf32>
    %c0_14 = arith.constant 0 : index
    %c0_15 = arith.constant 0 : index
    %c0_16 = arith.constant 0 : index
    %37 = vector.load %arg4[%c0_14, %c0_15, %c0_16] : memref<1x32x128xf32, #tpu.memory_space<vmem>>, vector<1x32x128xf32>
    %38 = vector.shape_cast %37 : vector<1x32x128xf32> to vector<32x128xf32>
    %39 = vector.shape_cast %36 : vector<32x128xf32> to vector<1x32x128xf32>
    tpu.vector_store %arg4[%c0_14, %c0_15, %c0_16], %39 {strides = array<i32>} : memref<1x32x128xf32, #tpu.memory_space<vmem>>, vector<1x32x128xf32>,
    return
  }
  func.func @transform_0(%arg0: i32, %arg1: i32) -> (i32, i32, i32) {
    %c0_i32 = arith.constant 0 : i32
    %c0_i32_0 = arith.constant 0 : i32
    %c0_i32_1 = arith.constant 0 : i32
    return %arg0, %c0_i32, %c0_i32_0 : i32, i32, i32
  }
  func.func @transform_1(%arg0: i32, %arg1: i32) -> (i32, i32, i32) {
    %c0_i32 = arith.constant 0 : i32
    %c0_i32_0 = arith.constant 0 : i32
    return %arg0, %arg1, %c0_i32 : i32, i32, i32
  }
  func.func @transform_2(%arg0: i32, %arg1: i32) -> (i32, i32, i32) {
    %c0_i32 = arith.constant 0 : i32
    %c0_i32_0 = arith.constant 0 : i32
    return %arg0, %arg1, %c0_i32 : i32, i32, i32
  }
}

</mosaic_0001>

<bundles_post_ra>
// kernel: tpu_custom_call.1
= control target key start
LH: loop header
LB: loop body
LE: loop exit
PB: predicated region body
PF: predicated region fallthrough
CT: control target
= control target key end

     0   :  { %s1424_s0 = inlined_call_operand.hbm [shape: f32[2,64,128], index: 0, kind: input, shape index: {}]   ;;  %s1425_s1 = inlined_call_operand.hbm [shape: f32[2,64,64], index: 1, kind: input, shape index: {}]   ;;  %s1426_s2 = inlined_call_operand.hbm [shape: f32[2,64,128], index: 2, kind: output, shape index: {}]  }
   0x1   :  { %1441 = sst [smem:[#allocation17_spill]] %s1424_s0 }
   0x2   :  { %1442 = sst [smem:[#allocation18_spill]] %s1426_s2 }
   0x3   :  { %7 = vsyncpa [#allocation3], 0 }
   0x4   :  { %9 = vsyncpa [#allocation3 + $0x1], 0 }
   0x5   :  { %10 = vsyncpa [#allocation6], 0 }
   0x6   :  { %12 = vsyncpa [#allocation6 + $0x1], 0 }
   0x7   :  { %13 = vsyncpa [#allocation4], 0 }
   0x8   :  { %15 = vsyncpa [#allocation4 + $0x1], 0  ;;  %s1050_s9 = smov 0   ;;  %s1052_s10 = smov 0  }
   0x9   :  { %s1054_s11 = smov 0   ;;  %s1056_s12 = smov 0  }
   0xa   :  { %s1058_s13 = smov 0   ;;  %s1060_s14 = smov 0  }
   0xb   :  { %s1062_s15 = smov 0   ;;  %s1064_s16 = smov 0  }
   0xc   :  { %s1066_s17 = smov 0   ;;  %s1068_s18 = smov 0  }
   0xd   :  { %s1070_s19 = smov 0  }
   0xe LB: > { %1443 = sst [smem:[#allocation11_spill]] %s986_s9  ;;  %s613_s20 = sadd.s32 4294967295, %s1026_s19   ;;  %s1026_s19 = sphi %s1070_s19, %s21_s19   ;;  %s1022_s18 = sphi %s1068_s18, %s1484_s18   ;;  %s1018_s17 = sphi %s1066_s17, %s1483_s17   ;;  %s1014_s16 = sphi %s1064_s16, %s1482_s16   ;;  %s1010_s15 = sphi %s1062_s15, %s1481_s15   ;;  %s1006_s14 = sphi %s1060_s14, %s1480_s14   ;;  %s1002_s13 = sphi %s1058_s13, %s1479_s13   ;;  %s998_s12 = sphi %s1056_s12, %s1478_s12   ;;  %s994_s11 = sphi %s1054_s11, %s1477_s11   ;;  %s990_s10 = sphi %s1052_s10, %s1476_s10   ;;  %s986_s9 = sphi %s1050_s9, %s1475_s9  }
   0xf   : > { %1444 = sst [smem:[#allocation12_spill]] %s1014_s16  ;;  %s33_s21 = sadd.s32 1, %s1022_s18 }
  0x10   : > { %s40_s22 = sadd.s32 1, %s1006_s14  ;;  %p47_p0 = scmp.ne.s32.totalorder %s1006_s14, %s1002_s13 }
  0x11   : > { %p1428_p1 = scmp.eq.s32.totalorder %s1026_s19, 0  ;;  %p53_p2 = scmp.ne.s32.totalorder %s1002_s13, %s998_s12 }
  0x12   : > { %p1112_p3 = scmp.eq.s32.totalorder %s613_s20, 0  ;;  %p1427_p5 = scmp.lt.s32.totalorder %s1026_s19, 4 }
  0x13   : > { %p49_p4 = por %p1428_p1, %p47_p0  ;;  %s133_s25 = sand.u32 1, %s1006_s14  }
  0x14   : > { %p1121_p6 = por %p1112_p3, %p53_p2  ;;  %s617_s26 = sshll.u32 %s133_s25, 6 }
  0x15   : > { %s638_s27 = sshll.u32 %s1022_s18, 10  ;;  %s1447_s0 = sld [smem:[#allocation17_spill]] }
  0x16   : > { %s1446_s24 = scalar_select %p1121_p6, 1, 0 }
  0x17   : > { %s137_s3 = scalar_lea.vmem [#allocation2], %s617_s26  ;;  %p1136_p7 = pnand %p1427_p5, %p49_p4 }
  0x18   : > { %s144_s4 = sshll.u32 %s137_s3, 4  ;;  %s1141_s6 = scalar_lea.sflag [#allocation3], %s133_s25  ;;  %s1132_s4 = int_to_ptr.vmem [resolvable:$true] %s144_s4 }
  0x19   : > { %p842_p10 = pneg %p1136_p7 }
  0x1b   : > { %s1130_s30 = scalar_lea.hbm %s1447_s0, %s638_s27  ;;  %s845_s26 = scalar_lea.hbm %s1447_s0, 2048 }
  0x1c   : > { %s840_s7 = scalar_lea.hbm %s1130_s30, 1024  ;;  %p846_p13 = scmp.lt.u32.totalorder %s1130_s30, %s1447_s0 }
  0x1d   : > { %p841_p9 = scmp.ne.s32.totalorder %s1130_s30, %s840_s7  ;;  %p847_p0 = scmp.lt.u32.totalorder %s845_s26, %s840_s7 }
  0x1e   : > { %p849_p4 = scmp.lt.u32.totalorder %s840_s7, %s1130_s30 }
  0x1f   : > { %p843_p11 = pnand %p842_p10, %p841_p9  ;;  %p848_p2 = por %p847_p0, %p846_p13 }
  0x21   : > { %p844_p12 = pneg %p843_p11  ;;  %p850_p5 = por %p849_p4, %p848_p2 }
  0x23   : > { %p851_p1 = pnand %p850_p5, %p844_p12 }
  0x25   : > { %854 = shalt.err (!%p851_p1)
}
  0x26   : > { %s855_s25 = scalar_lea.vmem %s1132_s4, 1024  ;;  %s1028_s29 = smov [#allocation2]  }
  0x27   : > { %p856_p9 = scmp.ne.s32.totalorder %s1132_s4, %s855_s25  ;;  %s860_s3 = sshll.u32 %s1028_s29, 4  ;;  %s861_s3 = int_to_ptr.vmem [resolvable:$false] %s860_s3 }
  0x28   : > { %s862_s8 = scalar_lea.vmem %s861_s3, 2048  ;;  %p863_p6 = scmp.lt.s32.totalorder %s1132_s4, %s861_s3 }
  0x29   : > { %p858_p11 = pnand %p856_p9, %p842_p10  ;;  %p864_p13 = scmp.lt.s32.totalorder %s862_s8, %s855_s25 }
  0x2b   : > { %p859_p8 = pneg %p858_p11  ;;  %p865_p0 = por %p864_p13, %p863_p6 }
  0x2d   : > { %p866_p2 = pnand %p865_p0, %p859_p8 }
  0x2f   : > { %869 = shalt.err (!%p866_p2)
}
  0x30   : > { %s1430_s7 = smov 128   ;;  %s1431_s12 = smov 8  }
  0x31   : > { %706 = dma.hbm_to_vmem [thread:$0]  (!%p1136_p7), %s1130_s30, 1024, %s1132_s4, %s1141_s6, %s1430_s7, %s1430_s7, %s1431_s12  }
  0x32   : > { %p175_p1 = scmp.lt.s32.totalorder %s1026_s19, 5  ;;  %p1449_p5 = scmp.ge.s32.totalorder %s1026_s19, 1 }
  0x33   : > { %s614_s27 = sadd.s32 4294967294, %s1026_s19   ;;  %s30_s28 = sadd.s32 1, %s1018_s17 }
  0x34   : > { %p1175_p6 = pnand %p1449_p5, %p175_p1  ;;  %p31_p8 = scmp.ge.s32.totalorder %s30_s28, 2 }
  0x35   : > { %s68_s25 = sadd.s32 1, %s994_s11  ;;  %p75_p10 = scmp.ne.s32.totalorder %s994_s11, %s990_s10 }
  0x36   : > { %p81_p12 = scmp.ne.s32.totalorder %s990_s10, %s986_s9  ;;  %s1486_s28 = smov (%p31_p8, %s30_s28), 0 }
  0x37   : > { %1451 = sst [smem:[#allocation13_spill]] %s1486_s28  ;;  %s1488_s21 = smov (!%p31_p8, %s33_s21), %s1022_s18 }
  0x38   : > { %s64_s30 = ssub.s32 %s1018_s17, %s1486_s28  ;;  %p1452_p7 = scmp.eq.s32.totalorder %s1026_s19, 0 }
  0x39   : > { %p35_p9 = scmp.ge.s32.totalorder %s1488_s21, 2  ;;  %p1201_p11 = por %p81_p12, %p1112_p3 }
  0x3a   : > { %p1195_p4 = por %p75_p10, %p1452_p7  ;;  %p107_p13 = scmp.eq.s32.totalorder %s613_s20, 3 }
  0x3b   : > { %s1454_s5 = scalar_select %p1201_p11, 1, 0 }
  0x3c   : > { %p113_p0 = scmp.eq.s32.totalorder %s614_s27, 3  ;;  %s1490_s21 = smov (%p35_p9, %s1488_s21), 0 }
  0x3d   : > { %1455 = sst [smem:[#allocation14_spill]] %s1490_s21  ;;  %p1209_p2 = por %p107_p13, %p75_p10 }
  0x3e   : > { %p1213_p1 = por %p113_p0, %p81_p12  ;;  %s37_s23 = ssub.s32 %s1022_s18, %s1490_s21 }
  0x3f   : > { %s1456_s6 = scalar_select %p1209_p2, 1, 0 }
  0x40   : > { %s1458_s29 = scalar_select %p1213_p1, 1, 0 }
  0x41   : > { %1457 = sst [smem:[#allocation15_spill]] %s1456_s6  ;;  %s154_s3 = sand.u32 1, %s994_s11  }
  0x42   : > { %1459 = sst [smem:[#allocation16_spill]] %s1458_s29  ;;  %p38_p3 = scmp.eq.s32.totalorder %s37_s23, 0 }
  0x43   : > { %s65_s8 = sor.u32 %s64_s30, %s37_s23  ;;  %s620_s7 = sshll.u32 %s154_s3, 5 }
  0x44   : > { %p66_p5 = scmp.eq.s32.totalorder %s65_s8, 0  ;;  %s621_s12 = sshll.u32 %s1018_s17, 2 }
  0x45   : > { %s1223_s20 = scalar_select %p38_p3, %s1006_s14, %s40_s22  }
  0x46   : > { %s1226_s27 = scalar_select %p66_p5, %s994_s11, %s68_s25  }
  0x47   : > { %s622_s0 = sshll.u32 %s1022_s18, 3  ;;  %s158_s9 = scalar_lea.vmem [#allocation5], %s620_s7 }
  0x48   : > { %s164_s28 = sadd.s32 %s622_s0, %s621_s12  ;;  %s167_s2 = sshll.u32 %s158_s9, 4  ;;  %s1230_s2 = int_to_ptr.vmem [resolvable:$true] %s167_s2 }
  0x49   : > { %s623_s6 = sshll.u32 %s164_s28, 7  ;;  %p1460_p8 = scmp.lt.s32.totalorder %s1026_s19, 4 }
  0x4a   : > { %s1235_s16 = scalar_lea.hbm %s1425_s1, %s623_s6  ;;  %s1245_s0 = scalar_lea.sflag [#allocation6], %s154_s3 }
  0x4b   : > { %p1241_p10 = pnand %p1460_p8, %p1195_p4  ;;  %s870_s9 = scalar_lea.hbm %s1235_s16, 512 }
  0x4c   : > { %p871_p12 = scmp.ne.s32.totalorder %s1235_s16, %s870_s9  ;;  %s875_s12 = scalar_lea.hbm %s1425_s1, 2048 }
  0x4d   : > { %p872_p7 = pneg %p1241_p10  ;;  %p876_p4 = scmp.lt.u32.totalorder %s1235_s16, %s1425_s1 }
  0x4e   : > { %p877_p0 = scmp.lt.u32.totalorder %s875_s12, %s870_s9  ;;  %p879_p5 = scmp.lt.u32.totalorder %s870_s9, %s1235_s16 }
  0x4f   : > { %p873_p9 = pnand %p872_p7, %p871_p12 }
  0x50   : > { %p878_p3 = por %p877_p0, %p876_p4 }
  0x51   : > { %p874_p13 = pneg %p873_p9 }
  0x52   : > { %p880_p8 = por %p879_p5, %p878_p3 }
  0x54   : > { %p881_p1 = pnand %p880_p8, %p874_p13 }
  0x56   : > { %884 = shalt.err (!%p881_p1)
}
  0x57   : > { %s885_s30 = scalar_lea.vmem %s1230_s2, 512  ;;  %s1031_s4 = smov [#allocation5]  }
  0x58   : > { %p886_p12 = scmp.ne.s32.totalorder %s1230_s2, %s885_s30  ;;  %s890_s6 = sshll.u32 %s1031_s4, 4  ;;  %s891_s6 = int_to_ptr.vmem [resolvable:$false] %s890_s6 }
  0x59   : > { %s892_s29 = scalar_lea.vmem %s891_s6, 1024  ;;  %p893_p11 = scmp.lt.s32.totalorder %s1230_s2, %s891_s6 }
  0x5a   : > { %p888_p9 = pnand %p886_p12, %p872_p7  ;;  %p894_p4 = scmp.lt.s32.totalorder %s892_s29, %s885_s30 }
  0x5c   : > { %p889_p2 = pneg %p888_p9  ;;  %p895_p0 = por %p894_p4, %p893_p11 }
  0x5e   : > { %p896_p3 = pnand %p895_p0, %p889_p2 }
  0x60   : > { %899 = shalt.err (!%p896_p3)
}
  0x61   : > { %s1462_s23 = smov 8   ;;  %s1463_s3 = smov 128  }
  0x62   : > { %709 = dma.hbm_to_vmem [thread:$0]  (!%p1241_p10), %s1235_s16, 512, %s1230_s2, %s1245_s0, %s1463_s3, %s1463_s3, %s1462_s23  }
  0x63   : > { %179 = sbr.rel (%p1175_p6) target bundleno = 723 (0x2d3), region = 28  ;;  %s181_s8 = sand.u32 (!%p1175_p6), 1, %s1002_s13  }
  0x64   : > { %s625_s9 = sshll.u32 (!%p1175_p6), %s181_s8, 6  ;;  %s182_s21 = scalar_lea.sflag (!%p1175_p6), [#allocation3], %s181_s8 }
  0x65   : > { %s185_s7 = scalar_lea.vmem (!%p1175_p6), [#allocation2], %s625_s9  ;;  %p1464_p11 = scmp.ne.s32.totalorder (!%p1175_p6), %s1446_s24, 0 }
  0x6a   : > { %973 = dma.done.wait (%p1464_p11), %s182_s21, 1024  }
  0x6b   : > { %975 = vsyncadd (%p1464_p11), %s182_s21, 4294966272  ;;  %s1284_s22 = sand.u32 1, %s990_s10   ;;  %p1465_p6 = scmp.ne.s32.totalorder %s1454_s5, 0 }
  0x6c   : > { %s626_s2 = sshll.u32 %s1284_s22, 5  ;;  %s191_s16 = scalar_lea.sflag [#allocation6], %s1284_s22 }
  0x6d   : > { %s1290_s26 = scalar_lea.vmem [#allocation5], %s626_s2 }
  0x6e   : > { %977 = dma.done.wait (%p1465_p6), %s191_s16, 512  }
  0x6f   : > { %979 = vsyncadd (%p1465_p6), %s191_s16, 4294966784  ;;  %v226_v0 = vld [vmem:[%s185_s7] sm:$0xff]  ;;  %v227_v1 = vld [vmem:[%s185_s7 + $0x8] sm:$0xff]  ;;  %vm234_vm0 = vcmask 523264   ;;  %s1466_s24 = sld [smem:[#allocation12_spill]]  ;;  %s633_s5 = sshll.u32 %s1010_s15, 2 }
  0x70   : > { %v228_v2 = vld [vmem:[%s185_s7 + $0x10] sm:$0xff]  ;;  %v673_v3 = vpack.c.bf16 %v227_v1, %v226_v0  ;;  %v229_v4 = vld [vmem:[%s185_s7 + $0x18] sm:$0xff]  ;;  %v230_v6 = vld [vmem:[%s185_s7 + $0x20] sm:$0xff]  ;;  %s219_s28 = scalar_lea.vmem [#allocation7], %s626_s2  ;;  %s1467_s30 = sld [smem:[#allocation15_spill]] }
  0x71   : > { %v677_v5 = vpack.c.bf16 %v229_v4, %v228_v2  ;;  %v231_v7 = vld [vmem:[%s185_s7 + $0x28] sm:$0xff]  ;;  %v222_v8 = vld [vmem:[%s1290_s26] sm:$0xff]  ;;  %v224_v9 = vld [vmem:[%s1290_s26 + $0x10] sm:$0xff]  ;;  %s500_s25 = sshll.u32 %s219_s28, 4  ;;  %s1468_s29 = sld [smem:[#allocation18_spill]]  ;;  %s1360_s25 = int_to_ptr.vmem [resolvable:$true] %s500_s25 }
  0x72   : > { %674 = vmatprep.subr.bf16.mxu0 %v673_v3  ;;  %689 = vmatprep.subr.bf16.mxu1 %v673_v3  ;;  %v681_v10 = vpack.c.bf16 %v231_v7, %v230_v6  ;;  %v232_v11 = vld [vmem:[%s185_s7 + $0x30] sm:$0xff]  ;;  %v233_v12 = vld [vmem:[%s185_s7 + $0x38] sm:$0xff]  ;;  %v223_v14 = vld [vmem:[%s1290_s26 + $0x8] sm:$0xff]  ;;  %s485_s3 = scalar_lea.sflag [#allocation4], %s1284_s22  ;;  %s900_s8 = scalar_lea.vmem %s1360_s25, 512 }
  0x73   : > { %676 = vmatpush3.bf16.msra.mxu0 %v673_v3  ;;  %693 = vmatpush3.bf16.msra.mxu1 %v673_v3  ;;  %v685_v13 = vpack.c.bf16 %v233_v12, %v232_v11  ;;  %v225_v15 = vld [vmem:[%s1290_s26 + $0x18] sm:$0xff]  ;;  %p901_p2 = scmp.ne.s32.totalorder %s1360_s25, %s900_s8  ;;  %s1032_s9 = smov [#allocation7]  }
  0x74   : > { %678 = vmatprep.subr.bf16.mxu0 %v677_v5  ;;  %690 = vmatprep.subr.bf16.mxu1 %v677_v5  ;;  %s904_s21 = sshll.u32 %s1032_s9, 4  ;;  %s905_s21 = int_to_ptr.vmem [resolvable:$false] %s904_s21 }
  0x75   : > { %667 = vmatprep.mubr.msk.f32.mxu0 %vm234_vm0, %v222_v8  ;;  %670 = vmatprep.mubr.msk.f32.mxu1 %vm234_vm0, %v224_v9  ;;  %s634_s0 = sshll.u32 %s1466_s24, 3  ;;  %s906_s7 = scalar_lea.vmem %s905_s21, 1024 }
  0x76   : > { %s497_s12 = sadd.s32 %s634_s0, %s633_s5  ;;  %p1469_p1 = scmp.ne.s32.totalorder %s1467_s30, 0 }
  0x77   : > { %680 = vmatpush3.bf16.msra.mxu0 %v677_v5  ;;  %694 = vmatpush3.bf16.msra.mxu1 %v677_v5  ;;  %s635_s15 = sshll.u32 %s497_s12, 7  ;;  %p907_p13 = scmp.lt.s32.totalorder %s1360_s25, %s905_s21 }
  0x78   : > { %682 = vmatprep.subr.bf16.mxu0 %v681_v10  ;;  %691 = vmatprep.subr.bf16.mxu1 %v681_v10  ;;  %s1358_s23 = scalar_lea.hbm %s1468_s29, %s635_s15  ;;  %p902_p10 = pnand %p901_p2, %p1469_p1 }
  0x79   : > { %p908_p5 = scmp.lt.s32.totalorder %s906_s7, %s900_s8 }
  0x7a   : > { %p903_p7 = pneg %p902_p10 }
  0x7b   : > { %684 = vmatpush3.bf16.msra.mxu0 %v681_v10  ;;  %695 = vmatpush3.bf16.msra.mxu1 %v681_v10  ;;  %p909_p8 = por %p908_p5, %p907_p13 }
  0x7c   : > { %686 = vmatprep.subr.bf16.mxu0 %v685_v13  ;;  %692 = vmatprep.subr.bf16.mxu1 %v685_v13 }
  0x7d   : > { %p910_p12 = pnand %p909_p8, %p903_p7 }
  0x7f   : > { %688 = vmatpush3.bf16.msra.mxu0 %v685_v13  ;;  %696 = vmatpush3.bf16.msra.mxu1 %v685_v13 }
  0x82   : > { %668 = vmatmul.mubr.msk.f32.vlgmr.msra.gmra.mrb[0].mxu0 %vm234_vm0, %v223_v14  ;;  %671 = vmatmul.mubr.msk.f32.vlgmr.msra.gmra.mrb[0].mxu1 %vm234_vm0, %v225_v15 }
 0x155   : > { %v1304_v16 = vpop.f32.mrb[0].mxu0  ;;  %v1306_v17 = vpop.f32.mrb[0].mxu1 }
 0x156   : > { %v1308_v18 = vpop.f32.mrb[1].mxu0  ;;  %v1310_v19 = vpop.f32.mrb[1].mxu1  ;;  %v335_v22 = vmul.f32 %v1306_v17, %v1306_v17  ;;  %v333_v23 = vmul.f32 %v1304_v16, %v1304_v16 }
 0x157   : > { %v334_v20 = vmul.f32 %v1310_v19, %v1310_v19  ;;  %v332_v21 = vmul.f32 %v1308_v18, %v1308_v18 }
 0x159   : > { %340 = vadd.xlane.f32.xlu1 %v334_v20  ;;  %336 = vadd.xlane.f32.xlu0 %v332_v21 }
 0x15d   : > { %342 = vadd.xlane.f32.xlu1 %v335_v22  ;;  %338 = vadd.xlane.f32.xlu0 %v333_v23 }
 0x1e6   : > { %v341_v24 = vpop.xlane.xlu1 %340  ;;  %v337_v25 = vpop.xlane.xlu0 %336 }
 0x1e7   : > { %808 = vrsqrt.f32 %v341_v24  ;;  %vm360_vm1 = vcmp.eq.f32.partialorder %v341_v24, inf  ;;  %v363_v31 = vand.u32 2147483648, %v341_v24  ;;  %vm362_vm2 = vcmp.eq.f32.partialorder %v341_v24, 0.0 }
 0x1e8   : > { %810 = vrsqrt.f32 %v337_v25  ;;  %vm346_vm3 = vcmp.eq.f32.partialorder %v337_v25, inf  ;;  %v349_v34 = vand.u32 2147483648, %v337_v25  ;;  %vm348_vm4 = vcmp.eq.f32.partialorder %v337_v25, 0.0 }
 0x1ea   : > { %v343_v26 = vpop.xlane.xlu1 %342  ;;  %v339_v27 = vpop.xlane.xlu0 %338 }
 0x1eb   : > { %812 = vrsqrt.f32 %v343_v26  ;;  %vm367_vm5 = vcmp.eq.f32.partialorder %v343_v26, inf  ;;  %vm369_vm6 = vcmp.eq.f32.partialorder %v343_v26, 0.0  ;;  %v370_v42 = vand.u32 2147483648, %v343_v26 }
 0x1ec   : > { %814 = vrsqrt.f32 %v339_v27  ;;  %vm353_vm7 = vcmp.eq.f32.partialorder %v339_v27, inf  ;;  %v356_v46 = vand.u32 2147483648, %v339_v27  ;;  %vm355_vm8 = vcmp.eq.f32.partialorder %v339_v27, 0.0 }
 0x1f1   : > { %v809_v28 = vpop.eup %808 }
 0x1f2   : > { %v811_v29 = vpop.eup %810  ;;  %v359_v30 = vmul.f32 %v809_v28, %v341_v24 }
 0x1f3   : > { %v345_v32 = vmul.f32 %v811_v29, %v337_v25 }
 0x1f4   : > { %v361_v33 = vsel %vm360_vm1, %v341_v24, %v359_v30 }
 0x1f5   : > { %v813_v35 = vpop.eup %812  ;;  %v347_v36 = vsel %vm346_vm3, %v337_v25, %v345_v32  ;;  %v364_v37 = vsel %vm362_vm2, %v363_v31, %v361_v33 }
 0x1f6   : > { %v815_v38 = vpop.eup %814  ;;  %v366_v39 = vmul.f32 %v813_v35, %v343_v26  ;;  %v350_v40 = vsel %vm348_vm4, %v349_v34, %v347_v36  ;;  %v374_v41 = vmax.f32 %v364_v37, 1e-15 }
 0x1f7   : > { %v352_v43 = vmul.f32 %v815_v38, %v339_v27  ;;  %v372_v44 = vmax.f32 %v350_v40, 1e-15 }
 0x1f8   : > { %v368_v45 = vsel %vm367_vm5, %v343_v26, %v366_v39  ;;  %816 = vrcp.f32 %v374_v41  ;;  %vm378_vm10 = vcmp.gt.f32.partialorder %v374_v41, 3.106303 }
 0x1f9   : > { %v354_v47 = vsel %vm353_vm7, %v339_v27, %v352_v43  ;;  %818 = vrcp.f32 %v372_v44  ;;  %v371_v48 = vsel %vm369_vm6, %v370_v42, %v368_v45  ;;  %vm376_vm9 = vcmp.gt.f32.partialorder %v372_v44, 3.106303 }
 0x1fa   : > { %v357_v49 = vsel %vm355_vm8, %v356_v46, %v354_v47  ;;  %v375_v50 = vmax.f32 %v371_v48, 1e-15 }
 0x1fb   : > { %v373_v51 = vmax.f32 %v357_v49, 1e-15 }
 0x1fc   : > { %820 = vrcp.f32 %v375_v50  ;;  %vm379_vm12 = vcmp.gt.f32.partialorder %v375_v50, 3.106303 }
 0x1fd   : > { %822 = vrcp.f32 %v373_v51  ;;  %vm377_vm11 = vcmp.gt.f32.partialorder %v373_v51, 3.106303 }
 0x202   : > { %v817_v52 = vpop.eup %816 }
 0x203   : > { %v819_v53 = vpop.eup %818  ;;  %v385_v54 = vmul.f32 3.106303, %v817_v52 }
 0x204   : > { %v381_v55 = vmul.f32 3.106303, %v819_v53 }
 0x205   : > { %v390_v56 = vmul.f32 %v385_v54, %v1310_v19 }
 0x206   : > { %v821_v57 = vpop.eup %820  ;;  %v388_v58 = vmul.f32 %v381_v55, %v1308_v18 }
 0x207   : > { %v823_v59 = vpop.eup %822  ;;  %v387_v60 = vmul.f32 3.106303, %v821_v57  ;;  %v402_v62 = vsel %vm378_vm10, %v390_v56, %v1310_v19 }
 0x208   : > { %v400_v61 = vsel %vm376_vm9, %v388_v58, %v1308_v18  ;;  %v383_v63 = vmul.f32 3.106303, %v823_v59  ;;  %v1330_v4 = vmax.f32 %v402_v62, 0.0 }
 0x209   : > { %v1324_v0 = vmax.f32 %v400_v61, 0.0  ;;  %v391_v1 = vmul.f32 %v1306_v17, %v387_v60 }
 0x20a   : > { %v389_v2 = vmul.f32 %v1304_v16, %v383_v63  ;;  %v410_v8 = vmul.f32 %v1330_v4, %v1330_v4 }
 0x20b   : > { %v408_v3 = vmul.f32 %v1324_v0, %v1324_v0  ;;  %v403_v6 = vsel %vm379_vm12, %v391_v1, %v1306_v17 }
 0x20c   : > { %v401_v5 = vsel %vm377_vm11, %v389_v2, %v1304_v16  ;;  %v1340_v10 = vmax.f32 %v403_v6, 0.0 }
 0x20d   : > { %412 = vadd.xlane.f32.xlu0 %v408_v3  ;;  %v1334_v7 = vmax.f32 %v401_v5, 0.0 }
 0x20e   : > { %v411_v11 = vmul.f32 %v1340_v10, %v1340_v10 }
 0x20f   : > { %v409_v9 = vmul.f32 %v1334_v7, %v1334_v7 }
 0x211   : > { %416 = vadd.xlane.f32.xlu0 %v410_v8  ;;  %414 = vadd.xlane.f32.xlu1 %v409_v9 }
 0x215   : > { %418 = vadd.xlane.f32.xlu1 %v411_v11 }
 0x29a   : > { %v413_v12 = vpop.xlane.xlu0 %412 }
 0x29b   : > { %824 = vrsqrt.f32 %v413_v12  ;;  %vm422_vm13 = vcmp.eq.f32.partialorder %v413_v12, inf  ;;  %v425_v18 = vand.u32 2147483648, %v413_v12  ;;  %vm424_vm14 = vcmp.eq.f32.partialorder %v413_v12, 0.0 }
 0x29e   : > { %v415_v13 = vpop.xlane.xlu1 %414  ;;  %v417_v14 = vpop.xlane.xlu0 %416 }
 0x29f   : > { %826 = vrsqrt.f32 %v415_v13  ;;  %vm429_vm15 = vcmp.eq.f32.partialorder %v415_v13, inf  ;;  %vm431_vm0 = vcmp.eq.f32.partialorder %v415_v13, 0.0  ;;  %v432_v25 = vand.u32 2147483648, %v415_v13 }
 0x2a0   : > { %828 = vrsqrt.f32 %v417_v14  ;;  %vm436_vm1 = vcmp.eq.f32.partialorder %v417_v14, inf  ;;  %v439_v28 = vand.u32 2147483648, %v417_v14  ;;  %vm438_vm2 = vcmp.eq.f32.partialorder %v417_v14, 0.0 }
 0x2a2   : > { %v419_v15 = vpop.xlane.xlu1 %418 }
 0x2a3   : > { %830 = vrsqrt.f32 %v419_v15  ;;  %vm443_vm3 = vcmp.eq.f32.partialorder %v419_v15, inf  ;;  %v446_v36 = vand.u32 2147483648, %v419_v15  ;;  %vm445_vm4 = vcmp.eq.f32.partialorder %v419_v15, 0.0 }
 0x2a5   : > { %v825_v16 = vpop.eup %824 }
 0x2a6   : > { %v421_v17 = vmul.f32 %v825_v16, %v413_v12 }
 0x2a8   : > { %v423_v19 = vsel %vm422_vm13, %v413_v12, %v421_v17 }
 0x2a9   : > { %v827_v20 = vpop.eup %826  ;;  %v426_v21 = vsel %vm424_vm14, %v425_v18, %v423_v19 }
 0x2aa   : > { %v829_v22 = vpop.eup %828  ;;  %v448_v23 = vmax.f32 %v426_v21, 1e-15  ;;  %v428_v24 = vmul.f32 %v827_v20, %v415_v13 }
 0x2ab   : > { %v435_v26 = vmul.f32 %v829_v22, %v417_v14 }
 0x2ac   : > { %832 = vrcp.f32 %v448_v23  ;;  %v430_v27 = vsel %vm429_vm15, %v415_v13, %v428_v24  ;;  %vm452_vm5 = vcmp.gt.f32.partialorder %v448_v23, 3.106303 }
 0x2ad   : > { %v831_v29 = vpop.eup %830  ;;  %v433_v30 = vsel %vm431_vm0, %v432_v25, %v430_v27  ;;  %v437_v31 = vsel %vm436_vm1, %v417_v14, %v435_v26 }
 0x2ae   : > { %v449_v32 = vmax.f32 %v433_v30, 1e-15  ;;  %v440_v33 = vsel %vm438_vm2, %v439_v28, %v437_v31  ;;  %v442_v34 = vmul.f32 %v831_v29, %v419_v15 }
 0x2af   : > { %v450_v35 = vmax.f32 %v440_v33, 1e-15 }
 0x2b0   : > { %834 = vrcp.f32 %v449_v32  ;;  %v444_v37 = vsel %vm443_vm3, %v419_v15, %v442_v34  ;;  %vm453_vm6 = vcmp.gt.f32.partialorder %v449_v32, 3.106303 }
 0x2b1   : > { %836 = vrcp.f32 %v450_v35  ;;  %v447_v38 = vsel %vm445_vm4, %v446_v36, %v444_v37  ;;  %vm454_vm7 = vcmp.gt.f32.partialorder %v450_v35, 3.106303 }
 0x2b2   : > { %v451_v39 = vmax.f32 %v447_v38, 1e-15 }
 0x2b4   : > { %838 = vrcp.f32 %v451_v39  ;;  %vm455_vm8 = vcmp.gt.f32.partialorder %v451_v39, 3.106303 }
 0x2b6   : > { %v833_v40 = vpop.eup %832 }
 0x2b7   : > { %v457_v41 = vmul.f32 3.106303, %v833_v40 }
 0x2b9   : > { %v464_v42 = vmul.f32 %v457_v41, %v1324_v0 }
 0x2ba   : > { %v835_v43 = vpop.eup %834 }
 0x2bb   : > { %v837_v44 = vpop.eup %836  ;;  %v476_v45 = vsel %vm452_vm5, %v464_v42, %v1324_v0  ;;  %v459_v46 = vmul.f32 3.106303, %v835_v43 }
 0x2bc   : > { %480 = vst [vmem:[%s219_s28] sm:$0xff] %v476_v45  ;;  %v461_v47 = vmul.f32 3.106303, %v837_v44 }
 0x2bd   : > { %v465_v48 = vmul.f32 %v459_v46, %v1334_v7 }
 0x2be   : > { %v839_v49 = vpop.eup %838  ;;  %v466_v50 = vmul.f32 %v461_v47, %v1330_v4 }
 0x2bf   : > { %v477_v51 = vsel %vm453_vm6, %v465_v48, %v1334_v7  ;;  %v463_v52 = vmul.f32 3.106303, %v839_v49 }
 0x2c0   : > { %481 = vst [vmem:[%s219_s28 + $0x8] sm:$0xff] %v477_v51  ;;  %v478_v53 = vsel %vm454_vm7, %v466_v50, %v1330_v4 }
 0x2c1   : > { %482 = vst [vmem:[%s219_s28 + $0x10] sm:$0xff] %v478_v53  ;;  %v467_v54 = vmul.f32 %v463_v52, %v1340_v10 }
 0x2c3   : > { %v479_v55 = vsel %vm455_vm8, %v467_v54, %v1340_v10 }
 0x2c4   : > { %483 = vst [vmem:[%s219_s28 + $0x18] sm:$0xff] %v479_v55 }
 0x2c5   : > { %913 = shalt.err (!%p910_p12)
}
 0x2c6   : > { %s914_s2 = scalar_lea.hbm %s1358_s23, 512  ;;  %s918_s24 = scalar_lea.hbm %s1468_s29, 2048 }
 0x2c7   : > { %p915_p9 = scmp.ne.s32.totalorder %s1358_s23, %s914_s2  ;;  %p919_p3 = scmp.lt.u32.totalorder %s1358_s23, %s1468_s29 }
 0x2c8   : > { %p920_p11 = scmp.lt.u32.totalorder %s918_s24, %s914_s2  ;;  %p922_p2 = scmp.lt.u32.totalorder %s914_s2, %s1358_s23 }
 0x2c9   : > { %p916_p4 = pnand %p915_p9, %p1469_p1 }
 0x2ca   : > { %p921_p6 = por %p920_p11, %p919_p3 }
 0x2cb   : > { %p917_p0 = pneg %p916_p4 }
 0x2cc   : > { %p923_p10 = por %p922_p2, %p921_p6 }
 0x2ce   : > { %p924_p7 = pnand %p923_p10, %p917_p0 }
 0x2d0   : > { %927 = shalt.err (!%p924_p7)
}
 0x2d1   : > { %s1033_s12 = smov 128   ;;  %s1034_s28 = smov 8  }
 0x2d2   : > { %701 = dma.vmem_to_hbm [thread:$0]  (%p1469_p1), %s1360_s25, 512, %s1358_s23, %s485_s3, %s1033_s12, %s1033_s12, %s1034_s28  }
 0x2d3 PF: > { %s1470_s15 = sld [smem:[#allocation11_spill]]  ;;  %s1471_s4 = sld [smem:[#allocation16_spill]] }
 0x2d4   : > { %p715_p13 = scmp.ge.s32.totalorder %s1026_s19, 2 }
 0x2d9   : > { %s515_s6 = sand.u32 1, %s1470_s15   ;;  %p1472_p5 = scmp.ne.s32.totalorder %s1471_s4, 0 }
 0x2da   : > { %s516_s8 = scalar_lea.sflag [#allocation4], %s515_s6 }
 0x2db   : > { %p711_p8 = pnand %p715_p13, %p1472_p5 }
 0x2dd   : > { %981 = dma.done.wait (!%p711_p8), %s516_s8, 512  }
 0x2de   : > { %983 = vsyncadd (!%p711_p8), %s516_s8, 4294966784  ;;  %s21_s19 = sadd.s32 1, %s1026_s19   ;;  %s1473_s22 = sld [smem:[#allocation13_spill]] }
 0x2df   : > { %p18_p12 = scmp.ge.s32.totalorder %s21_s19, 6   ;;  %s1474_s25 = sld [smem:[#allocation14_spill]] }
 0x2e0   : > { %s1475_s9 = smov %s990_s10  ;;  %s1476_s10 = smov %s994_s11 }
 0x2e1   : > { %s1477_s11 = smov %s1226_s27  ;;  %s1478_s12 = smov %s1002_s13 }
 0x2e2   : > { %s1479_s13 = smov %s1006_s14  ;;  %s1480_s14 = smov %s1223_s20 }
 0x2e3   : > { %s1481_s15 = smov %s1018_s17  ;;  %s1482_s16 = smov %s1022_s18 }
 0x2e4   : > { %s1483_s17 = smov %s1473_s22  ;;  %20 = sbr.rel (!%p18_p12) target bundleno = 14 (0xe), region = 86 }
 0x2e5   : > { %s1484_s18 = smov %s1474_s25 }
 0x2eb   :  { %521 = vsyncpa [#allocation3], 1 }
 0x2ec   :  { %523 = vsyncpa [#allocation3 + $0x1], 1 }
 0x2ed   :  { %524 = vsyncpa [#allocation6], 1 }
 0x2ee   :  { %526 = vsyncpa [#allocation6 + $0x1], 1 }
 0x2ef   :  { %527 = vsyncpa [#allocation4], 1 }
 0x2f0   :  { %529 = vsyncpa [#allocation4 + $0x1], 1 }

</bundles_post_ra>
